<compile_context>
chip_gen: v7x
topology: tpu7x:2x2x1
jax: 0.10.0
libtpu: 0.0.40
codegen_flags: <defaults>
</compile_context>

<pallas_src>
import functools

import jax
import jax.numpy as jnp
import numpy as np
from jax import lax
from jax.experimental import pallas as pl
from jax.experimental.pallas import tpu as pltpu

_LANE = 128
_TM = 256            # output tile for the large-M symmetric path (matches v6e/v7x MXU)


# ----------------------------------------------------------------------------
# Hardware / tiling helpers
# ----------------------------------------------------------------------------
def _round_up(x, m):
    return ((x + m - 1) // m) * m


@functools.lru_cache(maxsize=None)
def _vmem_caps():
    """(working-set budget, vmem_limit_bytes) derived from the actual chip."""
    cap = 64 * 1024 * 1024                      # safe fallback (v7x per-core VMEM)
    try:
        info = pltpu.get_tpu_info()
        reported = int(getattr(info, "vmem_capacity_bytes", 0) or 0)
        if reported > 0:
            cap = reported
    except Exception:
        pass
    limit = int(cap * 0.85)                     # ~108 MiB on v5e/v6e, ~54 MiB on v7x
    budget = (limit * 3) // 4                   # slack for Mosaic internal scratch
    return budget, limit


def _mxu_precision(dtype):
    # f32 features: HIGHEST so the gram matches the torch f32 reference;
    # bf16 features: native MXU rate with f32 accumulation.
    return lax.Precision.HIGHEST if dtype == jnp.float32 else None


def _select_tk(m_rows, K, itemsize, n_feat_operands, resident_bytes):
    """Pick a K tile (multiple of 128) that fits the VMEM budget and minimizes
    zero-padding of K; returns (tk, K_padded) with K_padded % tk == 0."""
    budget, _ = _vmem_caps()
    K1 = _round_up(max(K, _LANE), _LANE)
    q_total = K1 // _LANE
    per_step = n_feat_operands * 2 * m_rows * _LANE * itemsize   # double-buffered
    avail = max(budget - resident_bytes, per_step)
    max_q = max(1, min(avail // per_step, q_total))
    best_q, best_pad = 1, None
    for q in range(int(max_q), 0, -1):          # descending -> largest tile wins ties
        pad = (-q_total) % q
        if best_pad is None or pad < best_pad:
            best_q, best_pad = q, pad
            if pad == 0:
                break
    tk = best_q * _LANE
    K2 = (q_total + best_pad) * _LANE
    return tk, K2


def _pad_k(feat, k_target):
    M, K = feat.shape
    if k_target > K:
        feat = jnp.pad(feat, ((0, 0), (0, k_target - K)))   # zeros don't change F@F.T
    return feat


def _tile_m(M):
    """Tile the (M, M) gram only when it yields real block parallelism."""
    if M % _TM == 0 and M // _TM >= 2:
        return _TM
    if M % 128 == 0 and M // 128 >= 4:
        return 128
    return None


def _upper_pairs(nb):
    ii = [i for i in range(nb) for _ in range(i, nb)]
    jj = [j for i in range(nb) for j in range(i, nb)]
    return jnp.asarray(ii, jnp.int32), jnp.asarray(jj, jnp.int32), len(ii)


def _compiler_params(dims):
    _, limit = _vmem_caps()
    return pltpu.CompilerParams(dimension_semantics=dims, vmem_limit_bytes=limit)


def _prepare_features(x, fast_bf16):
    a, b, c, d = x.shape
    M, K = a * b, c * d
    feat = x.reshape(M, K)                      # native dtype straight to the MXU
    if fast_bf16 and feat.dtype == jnp.float32:
        feat = feat.astype(jnp.bfloat16)        # opt-in accuracy/speed trade-off
    return feat, M, float(a * b * c * d)


# ----------------------------------------------------------------------------
# Kernels
# ----------------------------------------------------------------------------
def _gram_whole_kernel(f_ref, g_ref, *, inv_denom, precision):
    """Whole-M gram: accumulate F @ F.T directly into the resident output block."""
    k = pl.program_id(0)

    @pl.when(k == 0)
    def _():
        g_ref[...] = jnp.zeros_like(g_ref)

    f = f_ref[...]
    g_ref[...] += lax.dot_general(
        f, f, dimension_numbers=(((1,), (1,)), ((), ())),
        preferred_element_type=jnp.float32, precision=precision)

    @pl.when(k == pl.num_programs(0) - 1)
    def _():
        g_ref[...] *= inv_denom


def _gram_pair_kernel(ii_ref, jj_ref, a_ref, b_ref, g_ref, *, inv_denom, precision):
    """One upper-triangle block pair (i<=j) of the gram; grid (n_pairs, K_tiles)."""
    del ii_ref, jj_ref                          # consumed by the index maps
    k = pl.program_id(1)

    @pl.when(k == 0)
    def _():
        g_ref[...] = jnp.zeros_like(g_ref)

    g_ref[...] += lax.dot_general(
        a_ref[...], b_ref[...], dimension_numbers=(((1,), (1,)), ((), ())),
        preferred_element_type=jnp.float32, precision=precision)

    @pl.when(k == pl.num_programs(1) - 1)
    def _():
        g_ref[...] *= inv_denom


def _loss_whole_kernel(f_ref, t_ref, loss_ref, acc_ref, *,
                       inv_denom, inv_gsize, precision):
    """Fused gram-of-input (over K tiles) + MSE vs. target gram -> SMEM scalar."""
    k = pl.program_id(0)

    @pl.when(k == 0)
    def _():
        acc_ref[...] = jnp.zeros_like(acc_ref)

    f = f_ref[...]
    acc_ref[...] += lax.dot_general(
        f, f, dimension_numbers=(((1,), (1,)), ((), ())),
        preferred_element_type=jnp.float32, precision=precision)

    @pl.when(k == pl.num_programs(0) - 1)
    def _():
        diff = acc_ref[...] * inv_denom - t_ref[...]   # target fetched once (const map)
        loss_ref[0, 0] = jnp.sum(diff * diff) * inv_gsize


def _loss_pair_kernel(ii_ref, jj_ref, a_ref, b_ref, t_ref, sse_ref, acc_ref, *,
                      inv_denom, precision):
    """Upper-triangle block pair gram + per-pair SSE vs. the target tile."""
    del ii_ref, jj_ref
    k = pl.program_id(1)

    @pl.when(k == 0)
    def _():
        acc_ref[...] = jnp.zeros_like(acc_ref)

    acc_ref[...] += lax.dot_general(
        a_ref[...], b_ref[...], dimension_numbers=(((1,), (1,)), ((), ())),
        preferred_element_type=jnp.float32, precision=precision)

    @pl.when(k == pl.num_programs(1) - 1)
    def _():
        diff = acc_ref[...] * inv_denom - t_ref[...]
        sse_ref[...] = jnp.full(sse_ref.shape, jnp.sum(diff * diff), sse_ref.dtype)


# ----------------------------------------------------------------------------
# Pallas wrappers
# ----------------------------------------------------------------------------
def _gram_whole(feat, denom):
    M, K = feat.shape
    itemsize = jnp.dtype(feat.dtype).itemsize
    precision = _mxu_precision(feat.dtype)
    resident = 2 * M * M * 4                    # output block (assume 2 buffers)
    tk, K2 = _select_tk(M, K, itemsize, 1, resident)
    feat = _pad_k(feat, K2)
    return pl.pallas_call(
        functools.partial(_gram_whole_kernel, inv_denom=1.0 / denom,
                          precision=precision),
        out_shape=jax.ShapeDtypeStruct((M, M), jnp.float32),
        grid_spec=pltpu.PrefetchScalarGridSpec(
            num_scalar_prefetch=0,
            grid=(K2 // tk,),
            in_specs=[pl.BlockSpec((M, tk), lambda k: (0, k))],
            out_specs=pl.BlockSpec((M, M), lambda k: (0, 0)),
        ),
        compiler_params=_compiler_params(("arbitrary",)),
    )(feat)


def _gram_tiled_sym(feat, denom, tm):
    M, K = feat.shape
    itemsize = jnp.dtype(feat.dtype).itemsize
    precision = _mxu_precision(feat.dtype)
    nb = M // tm
    ii, jj, npairs = _upper_pairs(nb)
    resident = 2 * tm * tm * 4                  # output block (assume 2 buffers)
    tk, K2 = _select_tk(tm, K, itemsize, 2, resident)
    feat = _pad_k(feat, K2)
    blocks = pl.pallas_call(
        functools.partial(_gram_pair_kernel, inv_denom=1.0 / denom,
                          precision=precision),
        out_shape=jax.ShapeDtypeStruct((npairs, tm, tm), jnp.float32),
        grid_spec=pltpu.PrefetchScalarGridSpec(
            num_scalar_prefetch=2,
            grid=(npairs, K2 // tk),
            in_specs=[pl.BlockSpec((tm, tk), lambda p, k, ii, jj: (ii[p], k)),
                      pl.BlockSpec((tm, tk), lambda p, k, ii, jj: (jj[p], k))],
            out_specs=pl.BlockSpec((None, tm, tm), lambda p, k, ii, jj: (p, 0, 0)),
        ),
        compiler_params=_compiler_params(("parallel", "arbitrary")),
    )(ii, jj, feat, feat)
    # Mirror the upper-triangle block panel into the full symmetric gram (O(M^2),
    # negligible vs. the O(M^2*K) gram itself; left to XLA).
    g4 = jnp.zeros((nb, nb, tm, tm), jnp.float32)
    g4 = g4.at[jj, ii].set(jnp.swapaxes(blocks, -1, -2))
    g4 = g4.at[ii, jj].set(blocks)
    return jnp.transpose(g4, (0, 2, 1, 3)).reshape(M, M)


def _style_loss_whole(feat, target_gram, denom):
    M, K = feat.shape
    itemsize = jnp.dtype(feat.dtype).itemsize
    precision = _mxu_precision(feat.dtype)
    resident = 2 * M * M * 4 + M * M * 4        # target (2 bufs) + acc scratch
    tk, K2 = _select_tk(M, K, itemsize, 1, resident)
    feat = _pad_k(feat, K2)
    loss = pl.pallas_call(
        functools.partial(_loss_whole_kernel, inv_denom=1.0 / denom,
                          inv_gsize=1.0 / float(M * M), precision=precision),
        out_shape=jax.ShapeDtypeStruct((1, 1), jnp.float32),
        grid_spec=pltpu.PrefetchScalarGridSpec(
            num_scalar_prefetch=0,
            grid=(K2 // tk,),
            in_specs=[pl.BlockSpec((M, tk), lambda k: (0, k)),
                      pl.BlockSpec((M, M), lambda k: (0, 0))],
            out_specs=pl.BlockSpec(memory_space=pltpu.MemorySpace.SMEM),
            scratch_shapes=[pltpu.VMEM((M, M), jnp.float32)],
        ),
        compiler_params=_compiler_params(("arbitrary",)),
    )(feat, target_gram.astype(jnp.float32))
    return loss[0, 0]


def _style_loss_tiled_sym(feat, target_gram, denom, tm):
    M, K = feat.shape
    itemsize = jnp.dtype(feat.dtype).itemsize
    precision = _mxu_precision(feat.dtype)
    nb = M // tm
    ii, jj, npairs = _upper_pairs(nb)
    resident = 2 * tm * tm * 4 + tm * tm * 4 + 2 * 8 * 128 * 4
    tk, K2 = _select_tk(tm, K, itemsize, 2, resident)
    feat = _pad_k(feat, K2)
    sse = pl.pallas_call(
        functools.partial(_loss_pair_kernel, inv_denom=1.0 / denom,
                          precision=precision),
        out_shape=jax.ShapeDtypeStruct((npairs, 8, 128), jnp.float32),
        grid_spec=pltpu.PrefetchScalarGridSpec(
            num_scalar_prefetch=2,
            grid=(npairs, K2 // tk),
            in_specs=[pl.BlockSpec((tm, tk), lambda p, k, ii, jj: (ii[p], k)),
                      pl.BlockSpec((tm, tk), lambda p, k, ii, jj: (jj[p], k)),
                      pl.BlockSpec((tm, tm), lambda p, k, ii, jj: (ii[p], jj[p]))],
            out_specs=pl.BlockSpec((None, 8, 128), lambda p, k, ii, jj: (p, 0, 0)),
            scratch_shapes=[pltpu.VMEM((tm, tm), jnp.float32)],
        ),
        compiler_params=_compiler_params(("parallel", "arbitrary")),
    )(ii, jj, feat, feat, target_gram.astype(jnp.float32))
    # Gram (and gram target) are symmetric, so each off-diagonal block pair's SSE
    # counts twice; diagonal blocks once.
    weights = jnp.where(ii == jj, 1.0, 2.0).astype(jnp.float32)
    return jnp.sum(sse[:, 0, 0] * weights) / float(M * M)


# ----------------------------------------------------------------------------
# Public API (mirrors the PyTorch module)
# ----------------------------------------------------------------------------
def gram_matrix_pallas(x, fast_bf16=False):
    """Equivalent of torch gram_matrix: x is NCHW, returns (a*b, a*b) f32."""
    feat, M, denom = _prepare_features(x, fast_bf16)
    tm = _tile_m(M)
    if tm is not None:
        return _gram_tiled_sym(feat, denom, tm)
    return _gram_whole(feat, denom)


def style_loss_pallas(x, target_gram, fast_bf16=False):
    """Returns scalar MSE( gram_matrix(x), target_gram )."""
    feat, M, denom = _prepare_features(x, fast_bf16)
    assert target_gram.shape == (M, M)
    tm = _tile_m(M)
    if tm is not None:
        return _style_loss_tiled_sym(feat, target_gram, denom, tm)
    return _style_loss_whole(feat, target_gram, denom)


class StyleLoss:
    """Mirror of the PyTorch nn.Module: stores the target gram, forward returns
    its input unchanged and records `.loss`."""

    def __init__(self, target_feature):
        self.target = gram_matrix_pallas(target_feature)   # "detached" constant
        self.loss = None

    def __call__(self, x):
        self.loss = style_loss_pallas(x, self.target)
        return x


# ----------------------------------------------------------------------------
# Main
# ----------------------------------------------------------------------------
if __name__ == "__main__":
    key = jax.random.PRNGKey(0)
    k1, k2, k3, k4, k5 = jax.random.split(key, 5)

    def gram_ref_np(t_f32_np):
        a, b, c, d = t_f32_np.shape
        f = t_f32_np.astype(np.float64).reshape(a * b, c * d)
        return (f @ f.T) / float(a * b * c * d)

    # --- primary small case: batch=2, channels=4, spatial=16 -> features (8, 256)
    target_feature = jax.random.normal(k1, (2, 4, 16, 16), dtype=jnp.float32)
    x = jax.random.normal(k2, (2, 4, 16, 16), dtype=jnp.float32)

    module = StyleLoss(target_feature)
    out = module(x)
    jax.block_until_ready(out)
    jax.block_until_ready(module.loss)

    t_ref = gram_ref_np(np.asarray(target_feature))
    g_ref = gram_ref_np(np.asarray(x))
    loss_ref = np.mean((g_ref - t_ref) ** 2)

    np.testing.assert_allclose(np.asarray(module.target), t_ref, rtol=1e-5, atol=1e-6)
    np.testing.assert_allclose(np.asarray(module.loss), loss_ref, rtol=1e-4, atol=1e-9)
    np.testing.assert_allclose(np.asarray(out), np.asarray(x))   # identity pass-through

    # --- non-128-aligned spatial dims: exercises wrapper-side K zero-padding
    y_t = jax.random.normal(k3, (2, 4, 10, 15), dtype=jnp.float32)
    y = jax.random.normal(k4, (2, 4, 10, 15), dtype=jnp.float32)
    mod2 = StyleLoss(y_t)
    _ = mod2(y)
    jax.block_until_ready(mod2.loss)
    l2_ref = np.mean((gram_ref_np(np.asarray(y)) - gram_ref_np(np.asarray(y_t))) ** 2)
    np.testing.assert_allclose(np.asarray(mod2.target), gram_ref_np(np.asarray(y_t)),
                               rtol=1e-5, atol=1e-6)
    np.testing.assert_allclose(np.asarray(mod2.loss), l2_ref, rtol=1e-4, atol=1e-9)

    # --- large-M case: symmetric tiled gram + fused tiled MSE (M = 512)
    z_t = jax.random.normal(k5, (2, 256, 16, 16), dtype=jnp.float32)
    z = jax.random.normal(k2, (2, 256, 16, 16), dtype=jnp.float32)
    mod3 = StyleLoss(z_t)
    _ = mod3(z)
    jax.block_until_ready(mod3.loss)
    l3_ref = np.mean((gram_ref_np(np.asarray(z)) - gram_ref_np(np.asarray(z_t))) ** 2)
    np.testing.assert_allclose(np.asarray(mod3.target), gram_ref_np(np.asarray(z_t)),
                               rtol=1e-5, atol=1e-7)
    np.testing.assert_allclose(np.asarray(mod3.loss), l3_ref, rtol=1e-4, atol=1e-11)

    # --- native bf16 features (f32 accumulation on the MXU)
    x_bf16 = x.astype(jnp.bfloat16)
    g_bf16 = gram_matrix_pallas(x_bf16)
    jax.block_until_ready(g_bf16)
    g_bf16_ref = gram_ref_np(np.asarray(x_bf16.astype(jnp.float32)))
    np.testing.assert_allclose(np.asarray(g_bf16), g_bf16_ref, rtol=2e-3, atol=1e-6)

    # --- opt-in fast bf16 path for f32 inputs (looser tolerance by design)
    loss_fast = style_loss_pallas(x, module.target, fast_bf16=True)
    jax.block_until_ready(loss_fast)
    np.testing.assert_allclose(np.asarray(loss_fast), loss_ref, rtol=5e-2, atol=1e-6)

    print("KERNEL_OK")
</pallas_src>

<mosaic_0001>
module attributes {stable_mosaic.version = 11 : i64} {
  func.func @_gram_whole_kernel(%arg0: i32, %arg1: memref<8x256xf32, #tpu.memory_space<vmem>>, %arg2: memref<8x8xf32, #tpu.memory_space<vmem>>) attributes {dimension_semantics = [#tpu.dimension_semantics<arbitrary>], iteration_bounds = array<i64: 1>, scalar_prefetch = 0 : i64, scratch_operands = 0 : i64, tpu.core_type = #tpu.core_type<tc>, window_params = [{transform_indices = @transform_0, window_bounds = array<i64: 8, 256>}, {pipeline_mode = #tpu.pipeline_mode<synchronous>, transform_indices = @transform_1, window_bounds = array<i64: 8, 8>}]} {
    %c0_i32 = arith.constant 0 : i32
    %0 = arith.cmpi eq, %arg0, %c0_i32 : i32
    %1 = arith.extui %0 : i1 to i32
    %c0_i32_0 = arith.constant 0 : i32
    %2 = arith.cmpi ne, %1, %c0_i32_0 : i32
    scf.if %2 {
      %cst_8 = arith.constant 0.000000e+00 : f32
      %11 = vector.broadcast %cst_8 : f32 to vector<8x8xf32>
      %c0_9 = arith.constant 0 : index
      %c0_10 = arith.constant 0 : index
      %12 = vector.load %arg2[%c0_9, %c0_10] : memref<8x8xf32, #tpu.memory_space<vmem>>, vector<8x8xf32>
      tpu.vector_store %arg2[%c0_9, %c0_10], %11 {strides = array<i32>} : memref<8x8xf32, #tpu.memory_space<vmem>>, vector<8x8xf32>,
    } else {
    }
    %c0 = arith.constant 0 : index
    %c0_1 = arith.constant 0 : index
    %3 = vector.load %arg1[%c0, %c0_1] : memref<8x256xf32, #tpu.memory_space<vmem>>, vector<8x256xf32>
    %c0_2 = arith.constant 0 : index
    %c0_3 = arith.constant 0 : index
    %4 = vector.load %arg2[%c0_2, %c0_3] : memref<8x8xf32, #tpu.memory_space<vmem>>, vector<8x8xf32>
    %cst = arith.constant dense<0.000000e+00> : vector<8x8xf32>
    %5 = tpu.matmul %3, %3, %cst {dimension_numbers = #tpu.dot_dimension_numbers<[1], [1], [0], [0], [0, 0, 1, 0], [], []>, precision = #tpu.contract_precision<fp32>} : vector<8x256xf32>, vector<8x256xf32>, vector<8x8xf32> -> vector<8x8xf32>
    %6 = arith.addf %4, %5 : vector<8x8xf32>
    %c0_4 = arith.constant 0 : index
    %c0_5 = arith.constant 0 : index
    %7 = vector.load %arg2[%c0_4, %c0_5] : memref<8x8xf32, #tpu.memory_space<vmem>>, vector<8x8xf32>
    tpu.vector_store %arg2[%c0_4, %c0_5], %6 {strides = array<i32>} : memref<8x8xf32, #tpu.memory_space<vmem>>, vector<8x8xf32>,
    %c0_i32_6 = arith.constant 0 : i32
    %8 = arith.cmpi eq, %arg0, %c0_i32_6 : i32
    %9 = arith.extui %8 : i1 to i32
    %c0_i32_7 = arith.constant 0 : i32
    %10 = arith.cmpi ne, %9, %c0_i32_7 : i32
    scf.if %10 {
      %c0_8 = arith.constant 0 : index
      %c0_9 = arith.constant 0 : index
      %11 = vector.load %arg2[%c0_8, %c0_9] : memref<8x8xf32, #tpu.memory_space<vmem>>, vector<8x8xf32>
      %cst_10 = arith.constant 4.8828125E-4 : f32
      %12 = vector.broadcast %cst_10 : f32 to vector<8x8xf32>
      %13 = arith.mulf %11, %12 : vector<8x8xf32>
      %c0_11 = arith.constant 0 : index
      %c0_12 = arith.constant 0 : index
      %14 = vector.load %arg2[%c0_11, %c0_12] : memref<8x8xf32, #tpu.memory_space<vmem>>, vector<8x8xf32>
      tpu.vector_store %arg2[%c0_11, %c0_12], %13 {strides = array<i32>} : memref<8x8xf32, #tpu.memory_space<vmem>>, vector<8x8xf32>,
    } else {
    }
    return
  }
  func.func @transform_0(%arg0: i32) -> (i32, i32) {
    %c0_i32 = arith.constant 0 : i32
    %c0_i32_0 = arith.constant 0 : i32
    return %c0_i32, %arg0 : i32, i32
  }
  func.func @transform_1(%arg0: i32) -> (i32, i32) {
    %c0_i32 = arith.constant 0 : i32
    %c0_i32_0 = arith.constant 0 : i32
    %c0_i32_1 = arith.constant 0 : i32
    return %c0_i32, %c0_i32_0 : i32, i32
  }
}

</mosaic_0001>

<bundles_post_ra>
// kernel: tpu_custom_call.1
= control target key start
LH: loop header
LB: loop body
LE: loop exit
PB: predicated region body
PF: predicated region fallthrough
CT: control target
= control target key end

     0   :  { %6 = vsyncpa [#allocation3], 0  ;;  %s617_s0 = inlined_call_operand.hbm [shape: f32[8,256], index: 0, kind: input, shape index: {}]   ;;  %s618_s1 = inlined_call_operand.hbm [shape: f32[8,8], index: 1, kind: output, shape index: {}]  }
   0x1   :  { %7 = vsyncpa [#allocation4], 0  ;;  %s577_s6 = smov [#allocation2]   ;;  %s529_s10 = scalar_lea.hbm %s617_s0, 256 }
   0x2   :  { %s14_s7 = sshll.u32 %s577_s6, 4  ;;  %p530_p0 = scmp.ne.s32.totalorder %s617_s0, %s529_s10  ;;  %s15_s7 = int_to_ptr.vmem [resolvable:$true] %s14_s7 }
   0x3   :  { %p533_p1 = scmp.lt.u32.totalorder %s529_s10, %s617_s0 }
   0x5   :  { %p535_p2 = pnand %p533_p1, %p530_p0 }
   0x7   :  { %538 = shalt.err (!%p535_p2)
}
   0x8   :  { %s539_s15 = scalar_lea.vmem %s15_s7, 256  ;;  %p544_p4 = scmp.lt.s32.totalorder %s15_s7, %s15_s7 }
   0x9   :  { %p540_p3 = scmp.ne.s32.totalorder %s15_s7, %s539_s15  ;;  %p545_p5 = scmp.lt.s32.totalorder %s539_s15, %s539_s15 }
   0xb   :  { %p546_p6 = por %p545_p5, %p544_p4 }
   0xd   :  { %p547_p7 = pnand %p546_p6, %p540_p3 }
   0xf   :  { %550 = shalt.err (!%p547_p7)
}
  0x10   :  { %17 = dma.hbm_to_vmem [thread:$0]  %s617_s0, 256, %s15_s7, [#allocation3]  }
  0x11   :  { %573 = dma.done.wait [#allocation3], 256  }
  0x12   :  { %574 = vsyncadd [#allocation3], 4294967040  ;;  %v28_v0 = vld [vmem:[#allocation2 + $0x8] sm:$0xff]  ;;  %v27_v1 = vld [vmem:[#allocation2] sm:$0xff]  ;;  %vm25_vm0 = vcmask 64512   ;;  %v578_v12 = vmov 0.0  }
  0x13   :  { %v30_v2 = vand.u32 4294901760, %v28_v0  ;;  %v32_v3 = vand.u32 4294901760, %v27_v1  ;;  %26 = vst.msk [vmem:[#allocation5] sm:$0xff] %vm25_vm0, %v578_v12  ;;  %s579_s0 = smov [#allocation5]  }
  0x14   :  { %s517_s18 = sshll.u32 %s579_s0, 4  ;;  %s518_s18 = int_to_ptr.vmem [resolvable:$true] %s517_s18 }
  0x15   :  { %31 = vmatprep.subr.mxu0 %v30_v2  ;;  %v97_v4 = vsub.f32 %v28_v0, %v30_v2  ;;  %v103_v5 = vsub.f32 %v27_v1, %v32_v3  ;;  %187 = vmatprep.mubr.f32.mxu1 %v30_v2  ;;  %s551_s19 = scalar_lea.vmem %s518_s18, 128  ;;  %p556_p9 = scmp.lt.s32.totalorder %s518_s18, %s518_s18 }
  0x16   :  { %33 = vmatpush1.xpose.msra.mxu0 %v32_v3  ;;  %p552_p8 = scmp.ne.s32.totalorder %s518_s18, %s551_s19  ;;  %p557_p10 = scmp.lt.s32.totalorder %s551_s19, %s551_s19 }
  0x17   :  { %v98_v6 = vand.u32 4294901760, %v97_v4  ;;  %v104_v7 = vand.u32 4294901760, %v103_v5  ;;  %196 = vmatprep.subr.mxu0 %v97_v4 }
  0x18   :  { %p558_p11 = por %p557_p10, %p556_p9 }
  0x19   :  { %v99_v8 = vsub.f32 %v97_v4, %v98_v6  ;;  %v105_v9 = vsub.f32 %v103_v5, %v104_v7 }
  0x1a   :  { %v29_v27 = vld [vmem:[#allocation5] sm:$0xff]  ;;  %p559_p12 = pnand %p558_p11, %p552_p8 }
  0x1b   :  { %v100_v10 = vand.u32 4294901760, %v99_v8  ;;  %v106_v11 = vand.u32 4294901760, %v105_v9 }
  0x1d   :  { %117 = vmatprep.subr.mxu1 %v100_v10  ;;  %101 = vmatprep.mubr.f32.mxu0 %v100_v10 }
  0x1e   :  { %123 = vmatpush1.xpose.msra.mxu1 %v106_v11  ;;  %107 = vmatmul.mubr.f32.vlgmr.msra.gmra.mrb[0].mxu0 %v106_v11 }
  0x1f   :  { %199 = vmatpush1.xpose.msra.mxu0 %v103_v5  ;;  %273 = vmatprep.subr.mxu1 %v30_v2 }
  0x20   :  { %264 = vmatprep.mubr.f32.mxu0 %v97_v4  ;;  %353 = vmatprep.subr.mxu0 %v98_v6 }
  0x21   :  { %189 = vmatmul.mubr.f32.vlgmr.msra.gmra.mrb[0].mxu1 %v32_v3 }
  0x22   :  { %275 = vmatpush1.xpose.msra.mxu1 %v32_v3  ;;  %267 = vmatmul.mubr.f32.vlgmr.msra.gmra.mrb[2].mxu0 %v103_v5 }
  0x23   :  { %341 = vmatprep.mubr.f32.mxu1 %v98_v6  ;;  %357 = vmatpush1.xpose.msra.mxu0 %v104_v7 }
  0x24   :  { %429 = vmatprep.subr.mxu1 %v30_v2  ;;  %421 = vmatprep.mubr.f32.mxu0 %v30_v2 }
  0x25   :  { %345 = vmatmul.mubr.f32.vlgmr.msra.gmra.mrb[2].mxu1 %v104_v7 }
  0x26   :  { %431 = vmatpush1.xpose.msra.mxu1 %v32_v3  ;;  %423 = vmatmul.mubr.f32.vlgmr.msra.gmra.mrb[4].mxu0 %v32_v3 }
  0x27   :  { %495 = vmatprep.mubr.f32.mxu1 %v30_v2 }
  0x29   :  { %497 = vmatmul.mubr.f32.vlgmr.msra.gmra.mrb[4].mxu1 %v32_v3 }
  0xf1   :  { %v108_v13 = vpop.f32.mrb[0].mxu0 }
  0xf2   :  { %v110_v14 = vpop.f32.mrb[1].mxu0 }
  0xf4   :  { %v190_v15 = vpop.f32.mrb[0].mxu1 }
  0xf5   :  { %v191_v16 = vadd.f32 %v190_v15, %v108_v13  ;;  %v192_v17 = vpop.f32.mrb[1].mxu1  ;;  %v268_v18 = vpop.f32.mrb[2].mxu0 }
  0xf6   :  { %v270_v19 = vpop.f32.mrb[3].mxu0 }
  0xf7   :  { %v269_v20 = vadd.f32 %v268_v18, %v191_v16 }
  0xf8   :  { %v346_v21 = vpop.f32.mrb[2].mxu1 }
  0xf9   :  { %v347_v22 = vadd.f32 %v346_v21, %v269_v20  ;;  %v348_v23 = vpop.f32.mrb[3].mxu1  ;;  %v424_v24 = vpop.f32.mrb[4].mxu0 }
  0xfa   :  { %v426_v25 = vpop.f32.mrb[5].mxu0 }
  0xfb   :  { %v425_v26 = vadd.f32 %v424_v24, %v347_v22 }
  0xfc   :  { %v498_v28 = vpop.f32.mrb[4].mxu1 }
  0xfd   :  { %v499_v29 = vadd.f32 %v498_v28, %v425_v26  ;;  %v500_v30 = vpop.f32.mrb[5].mxu1 }
  0xff   :  { %v502_v31 = vadd.f32 %v499_v29, %v29_v27 }
 0x101   :  { %504 = vst.msk [vmem:[#allocation5] sm:$0xff] %vm25_vm0, %v502_v31 }
 0x108   :  { %v508_v32 = vld [vmem:[#allocation5] sm:$0xff] }
 0x109   :  { %v509_v33 = vmul.f32 0.00048828125, %v508_v32 }
 0x10b   :  { %510 = vst.msk [vmem:[#allocation5] sm:$0xff] %vm25_vm0, %v509_v33 }
 0x10c   :  { %562 = shalt.err (!%p559_p12)
}
 0x10d   :  { %s563_s22 = scalar_lea.hbm %s618_s1, 128 }
 0x10e   :  { %p564_p13 = scmp.ne.s32.totalorder %s618_s1, %s563_s22  ;;  %p567_p0 = scmp.lt.u32.totalorder %s563_s22, %s618_s1 }
 0x110   :  { %p569_p1 = pnand %p567_p0, %p564_p13 }
 0x112   :  { %572 = shalt.err (!%p569_p1)
}
 0x113   :  { %520 = dma.vmem_to_hbm [thread:$0]  %s518_s18, 128, %s618_s1, [#allocation4]  }
 0x114   :  { %575 = dma.done.wait [#allocation4], 128  }
 0x115   :  { %576 = vsyncadd [#allocation4], 4294967168 }
 0x116   :  { %524 = vsyncpa [#allocation3], 1 }
 0x117   :  { %525 = vsyncpa [#allocation4], 1 }

</bundles_post_ra>
